<compile_context>
chip_gen: v7x
topology: tpu7x:2x2x1
jax: 0.10.0
libtpu: 0.0.40
codegen_flags: <defaults>
</compile_context>

<pallas_src>
import jax
import jax.numpy as jnp
from jax.experimental import pallas as pl
from jax.experimental.pallas import tpu as pltpu

LN_EPS = 1e-5  # torch.nn.LayerNorm default eps


def _vmem_limit_bytes():
    """Generation-aware scoped-VMEM limit (~60% of physical per-TC VMEM)."""
    default_cap = 64 * 1024 * 1024  # conservative: v7x per-TC physical VMEM
    try:
        cap = int(pltpu.get_tpu_info().vmem_capacity_bytes)
    except Exception:
        cap = default_cap
    if cap <= 0:
        cap = default_cap
    # ~38 MiB scoped on v7x (64 MiB physical), ~76 MiB on v5e/v6e (128 MiB).
    return int(cap * 0.6)


def add_and_norm_kernel(x_ref, sx_ref, g_ref, b_ref, o_ref):
    # Residual add in the HBM dtype, then a single upcast of the sum
    # (matches torch "add then LayerNorm-internal-upcast" at bf16).
    s = (x_ref[...] + sx_ref[...]).astype(jnp.float32)
    # One-pass mean/variance: var = E[s^2] - E[s]^2 (clamped for cancellation).
    m1 = jnp.mean(s, axis=-1, keepdims=True)
    m2 = jnp.mean(s * s, axis=-1, keepdims=True)
    var = jnp.maximum(m2 - m1 * m1, 0.0)
    inv = jax.lax.rsqrt(var + LN_EPS)
    y = (s - m1) * inv
    # Affine (gamma, beta): pre-cast to f32 in the wrapper, resident in VMEM.
    y = y * g_ref[...] + b_ref[...]
    o_ref[...] = y.astype(o_ref.dtype)


def _pick_row_tile(n_rows, d, in_bytes, out_bytes, vmem_limit_bytes):
    """Pick the row tile: big enough to amortize per-step overhead, small
    enough to fit VMEM and to keep >= ~8 grid steps (pipelining + v7x cores).
    """
    # Per-row VMEM footprint:
    #   inputs : 2 arrays x 2 DMA buffers x in_bytes
    #   output : 1 array  x 2 DMA buffers x out_bytes
    #   temps  : ~12 B/elem of f32 intermediates (sum, squared operand,
    #            normalized/affine result before the down-cast store)
    per_row = d * (2 * 2 * in_bytes + 2 * out_bytes + 12)
    budget = int(vmem_limit_bytes * 0.70)
    rows_by_vmem = budget // max(per_row, 1)

    # Bytes-based cap: ~4 MiB per input block keeps us in the measured
    # 85%+-of-roofline block-size class regardless of d.
    target_block_bytes = 4 * 1024 * 1024
    rows_by_bytes = max(1, target_block_bytes // max(d * in_bytes, 1))

    tr = min(rows_by_vmem, rows_by_bytes)
    tr = max(8, (tr // 8) * 8)  # sublane multiple

    # Guarantee a minimum number of grid steps so DMA/compute overlap survives
    # and the "parallel" row grid can shard across both TensorCores on v7x.
    rows_rounded = ((n_rows + 7) // 8) * 8
    desired_steps = min(8, max(1, rows_rounded // 8))
    tr_cap = max(8, ((rows_rounded // desired_steps) // 8) * 8)

    tr = min(tr, tr_cap, rows_rounded)
    return max(tr, 8)


def add_and_norm(x, sub_x, gamma, beta, *, row_tile=None, donate_x=False):
    """x, sub_x: [B, M, d]; gamma, beta: [d]. Returns LayerNorm(x + sub_x).

    For best throughput d should be a multiple of 128 (lane-dense stores);
    small d (like the smoke test's d=32) is correct but lane-sparse.
    """
    B, M, d = x.shape
    R = B * M
    x2 = x.reshape(R, d)
    sx2 = sub_x.reshape(R, d)
    # Pre-cast affine params to f32 once; constant index_map keeps them resident.
    g2 = gamma.astype(jnp.float32).reshape(1, d)
    b2 = beta.astype(jnp.float32).reshape(1, d)

    in_bytes = jnp.dtype(x.dtype).itemsize
    out_bytes = in_bytes
    vmem_limit = _vmem_limit_bytes()
    tr = row_tile if row_tile is not None else _pick_row_tile(
        R, d, in_bytes, out_bytes, vmem_limit)
    grid = (pl.cdiv(R, tr),)

    extra_kwargs = {}
    if donate_x:
        # Reuse x's HBM buffer for the output (caller must not need x after).
        extra_kwargs["input_output_aliases"] = {0: 0}

    out = pl.pallas_call(
        add_and_norm_kernel,
        out_shape=jax.ShapeDtypeStruct((R, d), x.dtype),
        grid_spec=pltpu.PrefetchScalarGridSpec(
            num_scalar_prefetch=0,
            grid=grid,
            in_specs=[
                pl.BlockSpec((tr, d), lambda i: (i, 0)),
                pl.BlockSpec((tr, d), lambda i: (i, 0)),
                pl.BlockSpec((1, d), lambda i: (0, 0)),   # gamma: resident
                pl.BlockSpec((1, d), lambda i: (0, 0)),   # beta:  resident
            ],
            out_specs=pl.BlockSpec((tr, d), lambda i: (i, 0)),
        ),
        compiler_params=pltpu.CompilerParams(
            dimension_semantics=("parallel",),
            vmem_limit_bytes=vmem_limit,
        ),
        **extra_kwargs,
    )(x2, sx2, g2, b2)
    return out.reshape(B, M, d)


def reference_add_and_norm(x, sub_x, gamma, beta):
    s = (x + sub_x).astype(jnp.float32)
    mean = jnp.mean(s, axis=-1, keepdims=True)
    var = jnp.mean((s - mean) ** 2, axis=-1, keepdims=True)
    y = (s - mean) * jax.lax.rsqrt(var + LN_EPS)
    return (y * gamma + beta).astype(x.dtype)


if __name__ == "__main__":
    B, M, d = 2, 8, 32
    key = jax.random.PRNGKey(0)
    kx, ks, kg, kb = jax.random.split(key, 4)
    x = jax.random.normal(kx, (B, M, d), dtype=jnp.float32)
    sub_x = jax.random.normal(ks, (B, M, d), dtype=jnp.float32)

    # nn.LayerNorm default init is weight=1, bias=0; perturb deterministically
    # to also exercise the affine path.
    gamma = 1.0 + 0.1 * jax.random.normal(kg, (d,), dtype=jnp.float32)
    beta = 0.1 * jax.random.normal(kb, (d,), dtype=jnp.float32)

    out = add_and_norm(x, sub_x, gamma, beta)
    jax.block_until_ready(out)

    ref = reference_add_and_norm(x, sub_x, gamma, beta)
    assert out.shape == (B, M, d)
    assert jnp.allclose(out, ref, atol=1e-5, rtol=1e-5), (
        float(jnp.max(jnp.abs(out - ref))))
    print("KERNEL_OK")
</pallas_src>

<mosaic_0001>
module attributes {stable_mosaic.version = 11 : i64} {
  func.func @add_and_norm_kernel(%arg0: i32, %arg1: memref<8x32xf32, #tpu.memory_space<vmem>>, %arg2: memref<8x32xf32, #tpu.memory_space<vmem>>, %arg3: memref<1x32xf32, #tpu.memory_space<vmem>>, %arg4: memref<1x32xf32, #tpu.memory_space<vmem>>, %arg5: memref<8x32xf32, #tpu.memory_space<vmem>>) attributes {dimension_semantics = [#tpu.dimension_semantics<parallel>], iteration_bounds = array<i64: 2>, scalar_prefetch = 0 : i64, scratch_operands = 0 : i64, tpu.core_type = #tpu.core_type<tc>, window_params = [{transform_indices = @transform_0, window_bounds = array<i64: 8, 32>}, {transform_indices = @transform_1, window_bounds = array<i64: 8, 32>}, {pipeline_mode = #tpu.pipeline_mode<synchronous>, transform_indices = @transform_2, window_bounds = array<i64: 1, 32>}, {pipeline_mode = #tpu.pipeline_mode<synchronous>, transform_indices = @transform_3, window_bounds = array<i64: 1, 32>}, {transform_indices = @transform_4, window_bounds = array<i64: 8, 32>}]} {
    %c0 = arith.constant 0 : index
    %c0_0 = arith.constant 0 : index
    %0 = vector.load %arg1[%c0, %c0_0] : memref<8x32xf32, #tpu.memory_space<vmem>>, vector<8x32xf32>
    %c0_1 = arith.constant 0 : index
    %c0_2 = arith.constant 0 : index
    %1 = vector.load %arg2[%c0_1, %c0_2] : memref<8x32xf32, #tpu.memory_space<vmem>>, vector<8x32xf32>
    %2 = arith.addf %0, %1 : vector<8x32xf32>
    %cst = arith.constant dense<0.000000e+00> : vector<8xf32>
    %3 = vector.multi_reduction <add>, %2, %cst [1] : vector<8x32xf32> to vector<8xf32>
    %4 = vector.shape_cast %3 : vector<8xf32> to vector<8x1xf32>
    %cst_3 = arith.constant 3.200000e+01 : f32
    %5 = vector.broadcast %cst_3 : f32 to vector<8x1xf32>
    %6 = arith.divf %4, %5 : vector<8x1xf32>
    %7 = arith.mulf %2, %2 : vector<8x32xf32>
    %cst_4 = arith.constant dense<0.000000e+00> : vector<8xf32>
    %8 = vector.multi_reduction <add>, %7, %cst_4 [1] : vector<8x32xf32> to vector<8xf32>
    %9 = vector.shape_cast %8 : vector<8xf32> to vector<8x1xf32>
    %cst_5 = arith.constant 3.200000e+01 : f32
    %10 = vector.broadcast %cst_5 : f32 to vector<8x1xf32>
    %11 = arith.divf %9, %10 : vector<8x1xf32>
    %12 = arith.mulf %6, %6 : vector<8x1xf32>
    %13 = arith.subf %11, %12 : vector<8x1xf32>
    %cst_6 = arith.constant 0.000000e+00 : f32
    %14 = vector.broadcast %cst_6 : f32 to vector<8x1xf32>
    %15 = arith.maximumf %13, %14 : vector<8x1xf32>
    %cst_7 = arith.constant 9.99999974E-6 : f32
    %16 = vector.broadcast %cst_7 : f32 to vector<8x1xf32>
    %17 = arith.addf %15, %16 : vector<8x1xf32>
    %18 = math.rsqrt %17 : vector<8x1xf32>
    %19 = vector.broadcast %6 : vector<8x1xf32> to vector<8x32xf32>
    %20 = arith.subf %2, %19 : vector<8x32xf32>
    %21 = vector.broadcast %18 : vector<8x1xf32> to vector<8x32xf32>
    %22 = arith.mulf %20, %21 : vector<8x32xf32>
    %c0_8 = arith.constant 0 : index
    %c0_9 = arith.constant 0 : index
    %23 = vector.load %arg3[%c0_8, %c0_9] : memref<1x32xf32, #tpu.memory_space<vmem>>, vector<1x32xf32>
    %24 = vector.broadcast %23 : vector<1x32xf32> to vector<8x32xf32>
    %25 = arith.mulf %22, %24 : vector<8x32xf32>
    %c0_10 = arith.constant 0 : index
    %c0_11 = arith.constant 0 : index
    %26 = vector.load %arg4[%c0_10, %c0_11] : memref<1x32xf32, #tpu.memory_space<vmem>>, vector<1x32xf32>
    %27 = vector.broadcast %26 : vector<1x32xf32> to vector<8x32xf32>
    %28 = arith.addf %25, %27 : vector<8x32xf32>
    %c0_12 = arith.constant 0 : index
    %c0_13 = arith.constant 0 : index
    %29 = vector.load %arg5[%c0_12, %c0_13] : memref<8x32xf32, #tpu.memory_space<vmem>>, vector<8x32xf32>
    tpu.vector_store %arg5[%c0_12, %c0_13], %28 {strides = array<i32>} : memref<8x32xf32, #tpu.memory_space<vmem>>, vector<8x32xf32>,
    return
  }
  func.func @transform_0(%arg0: i32) -> (i32, i32) {
    %c0_i32 = arith.constant 0 : i32
    %c0_i32_0 = arith.constant 0 : i32
    return %arg0, %c0_i32 : i32, i32
  }
  func.func @transform_1(%arg0: i32) -> (i32, i32) {
    %c0_i32 = arith.constant 0 : i32
    %c0_i32_0 = arith.constant 0 : i32
    return %arg0, %c0_i32 : i32, i32
  }
  func.func @transform_2(%arg0: i32) -> (i32, i32) {
    %c0_i32 = arith.constant 0 : i32
    %c0_i32_0 = arith.constant 0 : i32
    %c0_i32_1 = arith.constant 0 : i32
    return %c0_i32, %c0_i32_0 : i32, i32
  }
  func.func @transform_3(%arg0: i32) -> (i32, i32) {
    %c0_i32 = arith.constant 0 : i32
    %c0_i32_0 = arith.constant 0 : i32
    %c0_i32_1 = arith.constant 0 : i32
    return %c0_i32, %c0_i32_0 : i32, i32
  }
  func.func @transform_4(%arg0: i32) -> (i32, i32) {
    %c0_i32 = arith.constant 0 : i32
    %c0_i32_0 = arith.constant 0 : i32
    return %arg0, %c0_i32 : i32, i32
  }
}

</mosaic_0001>

<bundles_post_ra>
// kernel: tpu_custom_call.1
= control target key start
LH: loop header
LB: loop body
LE: loop exit
PB: predicated region body
PF: predicated region fallthrough
CT: control target
= control target key end

     0   :  { %9 = vsyncpa [#allocation3], 0  ;;  %s848_s0 = inlined_call_operand.hbm [shape: f32[16,32], index: 0, kind: input, shape index: {}]   ;;  %s849_s1 = inlined_call_operand.hbm [shape: f32[16,32], index: 1, kind: input, shape index: {}]   ;;  %s850_s2 = inlined_call_operand.vmem [shape: f32[1,32], index: 2, kind: input, shape index: {}]   ;;  %s851_s3 = inlined_call_operand.vmem [shape: f32[1,32], index: 3, kind: input, shape index: {}]   ;;  %s852_s4 = inlined_call_operand.hbm [shape: f32[16,32], index: 4, kind: output, shape index: {}]  }
   0x1   :  { %11 = vsyncpa [#allocation3 + $0x1], 0 }
   0x2   :  { %12 = vsyncpa [#allocation6], 0 }
   0x3   :  { %14 = vsyncpa [#allocation6 + $0x1], 0 }
   0x4   :  { %15 = vsyncpa [#allocation4], 0 }
   0x5   :  { %17 = vsyncpa [#allocation4 + $0x1], 0  ;;  %s625_s15 = smov 0   ;;  %s627_s16 = smov 0  }
   0x6   :  { %s629_s17 = smov 0   ;;  %s631_s18 = smov 0  }
   0x7 LB: > { %s646_s19 = sadd.s32 4294967295, %s595_s18   ;;  %s395_s20 = sadd.s32 4294967294, %s595_s18   ;;  %s595_s18 = sphi %s631_s18, %s871_s18   ;;  %s591_s17 = sphi %s629_s17, %s870_s17   ;;  %s587_s16 = sphi %s627_s16, %s869_s16   ;;  %s583_s15 = sphi %s625_s15, %s868_s15  }
   0x8   : > { %s650_s21 = sadd.s32 1, %s595_s18   ;;  %s30_s22 = sadd.s32 1, %s591_s17 }
   0x9   : > { %s27_s23 = ssub.s32 %s595_s18, %s650_s21  ;;  %p37_p0 = scmp.ne.s32.totalorder %s591_s17, %s587_s16 }
   0xa   : > { %p28_p1 = scmp.eq.s32.totalorder %s27_s23, 0  ;;  %p38_p2 = scmp.eq.s32.totalorder %s595_s18, 0 }
   0xb   : > { %p43_p3 = scmp.ne.s32.totalorder %s587_s16, %s583_s15  ;;  %p44_p4 = scmp.eq.s32.totalorder %s646_s19, 0 }
   0xc   : > { %s662_s24 = scalar_select %p28_p1, %s591_s17, %s30_s22  }
   0xd   : > { %p664_p5 = por %p38_p2, %p37_p0  ;;  %p668_p6 = por %p44_p4, %p43_p3 }
   0xe   : > { %p135_p7 = scmp.eq.s32.totalorder %s646_s19, 1  ;;  %p141_p8 = scmp.eq.s32.totalorder %s395_s20, 1 }
   0xf   : > { %s856_s26 = scalar_select %p668_p6, 1, 0 }
  0x10   : > { %p429_p10 = scmp.lt.s32.totalorder %s595_s18, 2  ;;  %p675_p11 = por %p135_p7, %p37_p0 }
  0x11   : > { %p679_p12 = por %p141_p8, %p43_p3  ;;  %s684_s29 = sand.u32 1, %s591_s17  }
  0x12   : > { %s857_s27 = scalar_select %p675_p11, 1, 0 }
  0x13   : > { %s858_s28 = scalar_select %p679_p12, 1, 0 }
  0x14   : > { %s399_s30 = sshll.u32 %s595_s18, 7  ;;  %s398_s5 = sshll.u32 %s684_s29, 3 }
  0x15   : > { %s693_s8 = scalar_lea.hbm %s848_s0, %s399_s30  ;;  %s171_s9 = scalar_lea.vmem [#allocation2], %s398_s5 }
  0x16   : > { %s178_s10 = sshll.u32 %s171_s9, 4  ;;  %p699_p13 = pnand %p429_p10, %p664_p5  ;;  %s703_s10 = int_to_ptr.vmem [resolvable:$true] %s178_s10 }
  0x17   : > { %s168_s12 = scalar_lea.sflag [#allocation3], %s684_s29  ;;  %s465_s13 = scalar_lea.hbm %s693_s8, 128 }
  0x18   : > { %p466_p2 = scmp.ne.s32.totalorder %s693_s8, %s465_s13  ;;  %p467_p3 = pneg %p699_p13 }
  0x19   : > { %s470_s22 = scalar_lea.hbm %s848_s0, 256  ;;  %p471_p5 = scmp.lt.u32.totalorder %s693_s8, %s848_s0 }
  0x1a   : > { %p468_p4 = pnand %p467_p3, %p466_p2  ;;  %p472_p8 = scmp.lt.u32.totalorder %s470_s22, %s465_s13 }
  0x1b   : > { %p474_p9 = scmp.lt.u32.totalorder %s465_s13, %s693_s8 }
  0x1c   : > { %p469_p7 = pneg %p468_p4  ;;  %p473_p10 = por %p472_p8, %p471_p5 }
  0x1e   : > { %p475_p0 = por %p474_p9, %p473_p10 }
  0x20   : > { %p476_p1 = pnand %p475_p0, %p469_p7 }
  0x22   : > { %479 = shalt.err (!%p476_p1)
}
  0x23   : > { %s480_s6 = scalar_lea.vmem %s703_s10, 128  ;;  %s597_s7 = smov [#allocation2]  }
  0x24   : > { %p481_p2 = scmp.ne.s32.totalorder %s703_s10, %s480_s6  ;;  %s485_s9 = sshll.u32 %s597_s7, 4  ;;  %s486_s9 = int_to_ptr.vmem [resolvable:$false] %s485_s9 }
  0x25   : > { %s487_s14 = scalar_lea.vmem %s486_s9, 256  ;;  %p488_p11 = scmp.lt.s32.totalorder %s703_s10, %s486_s9 }
  0x26   : > { %p483_p4 = pnand %p481_p2, %p467_p3  ;;  %p489_p5 = scmp.lt.s32.totalorder %s487_s14, %s480_s6 }
  0x28   : > { %p484_p12 = pneg %p483_p4  ;;  %p490_p8 = por %p489_p5, %p488_p11 }
  0x2a   : > { %p491_p9 = pnand %p490_p8, %p484_p12 }
  0x2c   : > { %494 = shalt.err (!%p491_p9)
}
  0x2d   : > { %421 = dma.hbm_to_vmem [thread:$0]  (!%p699_p13), %s693_s8, 128, %s703_s10, %s168_s12  }
  0x2e   : > { %p860_p0 = scmp.lt.s32.totalorder %s595_s18, 3  ;;  %p861_p1 = scmp.ge.s32.totalorder %s595_s18, 1 }
  0x2f   : > { %s746_s23 = scalar_lea.hbm %s849_s1, %s399_s30  ;;  %s189_s25 = scalar_lea.vmem [#allocation5], %s398_s5 }
  0x30   : > { %p737_p7 = pnand %p861_p1, %p860_p0  ;;  %s196_s6 = sshll.u32 %s189_s25, 4  ;;  %s197_s6 = int_to_ptr.vmem [resolvable:$true] %s196_s6 }
  0x31   : > { %s186_s8 = scalar_lea.sflag [#allocation6], %s684_s29  ;;  %s495_s10 = scalar_lea.hbm %s746_s23, 128 }
  0x32   : > { %s862_s13 = scalar_select %p737_p7, 1, 0 }
  0x33   : > { %p496_p11 = scmp.ne.s32.totalorder %s746_s23, %s495_s10  ;;  %s500_s30 = scalar_lea.hbm %s849_s1, 256 }
  0x34   : > { %p501_p2 = scmp.lt.u32.totalorder %s746_s23, %s849_s1  ;;  %p502_p4 = scmp.lt.u32.totalorder %s500_s30, %s495_s10 }
  0x35   : > { %p498_p12 = pnand %p496_p11, %p467_p3  ;;  %p504_p8 = scmp.lt.u32.totalorder %s495_s10, %s746_s23 }
  0x36   : > { %p503_p5 = por %p502_p4, %p501_p2 }
  0x37   : > { %p499_p10 = pneg %p498_p12 }
  0x38   : > { %p505_p9 = por %p504_p8, %p503_p5 }
  0x3a   : > { %p506_p0 = pnand %p505_p9, %p499_p10 }
  0x3c   : > { %509 = shalt.err (!%p506_p0)
}
  0x3d   : > { %s510_s29 = scalar_lea.vmem %s197_s6, 128  ;;  %s598_s5 = smov [#allocation5]  }
  0x3e   : > { %p511_p1 = scmp.ne.s32.totalorder %s197_s6, %s510_s29  ;;  %s515_s20 = sshll.u32 %s598_s5, 4  ;;  %s516_s20 = int_to_ptr.vmem [resolvable:$false] %s515_s20 }
  0x3f   : > { %s517_s22 = scalar_lea.vmem %s516_s20, 256  ;;  %p518_p6 = scmp.lt.s32.totalorder %s197_s6, %s516_s20 }
  0x40   : > { %p513_p11 = pnand %p511_p1, %p467_p3  ;;  %p519_p7 = scmp.lt.s32.totalorder %s517_s22, %s510_s29 }
  0x42   : > { %p514_p12 = pneg %p513_p11  ;;  %p520_p2 = por %p519_p7, %p518_p6 }
  0x44   : > { %p521_p4 = pnand %p520_p2, %p514_p12 }
  0x46   : > { %524 = shalt.err (!%p521_p4)
}
  0x47   : > { %424 = dma.hbm_to_vmem [thread:$0]  (!%p699_p13), %s746_s23, 128, %s197_s6, %s186_s8  }
  0x48   : > { %p863_p10 = scmp.ne.s32.totalorder %s862_s13, 0 }
  0x49   : > { %s773_s25 = sand.u32 (!%p863_p10), 1, %s587_s16   ;;  %p864_p6 = scmp.ne.s32.totalorder (!%p863_p10), %s856_s26, 0 }
  0x4a   : > { %205 = sbr.rel (%p863_p10) target bundleno = 273 (0x111), region = 36  ;;  %s776_s10 = sshll.u32 (!%p863_p10), %s773_s25, 3 }
  0x4b   : > { %s208_s12 = scalar_lea.sflag (!%p863_p10), [#allocation3], %s773_s25  ;;  %s211_s7 = scalar_lea.vmem (!%p863_p10), [#allocation2], %s776_s10 }
  0x51   : > { %570 = dma.done.wait (%p864_p6), %s208_s12, 128  }
  0x52   : > { %572 = vsyncadd (%p864_p6), %s208_s12, 4294967168  ;;  %s217_s11 = scalar_lea.sflag [#allocation6], %s773_s25  ;;  %s220_s13 = scalar_lea.vmem [#allocation5], %s776_s10 }
  0x53   : > { %574 = dma.done.wait (%p864_p6), %s217_s11, 128  }
  0x54   : > { %576 = vsyncadd (%p864_p6), %s217_s11, 4294967168  ;;  %v250_v0 = vld [vmem:[%s211_s7] sm:$0xff]  ;;  %v251_v1 = vld [vmem:[%s220_s13] sm:$0xff]  ;;  %vm253_vm0 = vcmask 261120   ;;  %s409_s30 = sshll.u32 %s646_s19, 7  ;;  %s249_s9 = scalar_lea.vmem [#allocation7], %s776_s10 }
  0x55   : > { %v252_v2 = vadd.f32 %v251_v1, %v250_v0  ;;  %v406_v16 = vld [vmem:[%s850_s2] ss:$0 sm:$0xff]  ;;  %s302_s14 = sshll.u32 %s249_s9, 4  ;;  %s803_s20 = scalar_lea.hbm %s852_s4, %s409_s30  ;;  %s805_s14 = int_to_ptr.vmem [resolvable:$true] %s302_s14 }
  0x56   : > { %v407_v18 = vld [vmem:[%s851_s3] ss:$0 sm:$0xff]  ;;  %s289_s22 = scalar_lea.sflag [#allocation4], %s773_s25  ;;  %s525_s12 = scalar_lea.vmem %s805_s14, 128 }
  0x57   : > { %v254_v3 = vsel %vm253_vm0, %v252_v2, 0.0  ;;  %v259_v4 = vmul.f32 %v252_v2, %v252_v2  ;;  %p526_p13 = scmp.ne.s32.totalorder %s805_s14, %s525_s12  ;;  %p865_p3 = scmp.ne.s32.totalorder %s857_s27, 0 }
  0x58   : > { %255 = vadd.xlane.f32.xlu0 %v254_v3  ;;  %s599_s19 = smov [#allocation7]  }
  0x59   : > { %v260_v5 = vsel %vm253_vm0, %v259_v4, 0.0  ;;  %p527_p7 = pnand %p526_p13, %p865_p3  ;;  %s529_s10 = sshll.u32 %s599_s19, 4  ;;  %s530_s10 = int_to_ptr.vmem [resolvable:$false] %s529_s10 }
  0x5a   : > { %s531_s7 = scalar_lea.vmem %s530_s10, 256  ;;  %p532_p8 = scmp.lt.s32.totalorder %s805_s14, %s530_s10 }
  0x5b   : > { %p528_p5 = pneg %p527_p7  ;;  %p533_p9 = scmp.lt.s32.totalorder %s531_s7, %s525_s12 }
  0x5c   : > { %261 = vadd.xlane.f32.xlu0 %v260_v5 }
  0x5d   : > { %p534_p0 = por %p533_p9, %p532_p8 }
  0x5f   : > { %p535_p1 = pnand %p534_p0, %p528_p5 }
  0xe5   : > { %v256_v6 = vpop.xlane.xlu0 %255 }
  0xe6   : > { %v258_v7 = vmul.f32 0.03125, %v256_v6 }
  0xe8   : > { %v264_v9 = vmul.f32 %v258_v7, %v258_v7  ;;  %v269_v14 = vsub.f32 %v252_v2, %v258_v7 }
  0xe9   : > { %v262_v8 = vpop.xlane.xlu0 %261 }
  0xea   : > { %v263_v10 = vmul.f32 0.03125, %v262_v8 }
  0xec   : > { %v265_v11 = vsub.f32 %v263_v10, %v264_v9 }
  0xee   : > { %v266_v12 = vmax.f32 %v265_v11, 0.0 }
  0xf0   : > { %v267_v13 = vadd.f32 1e-05, %v266_v12 }
  0xf2   : > { %463 = vrsqrt.f32 %v267_v13 }
  0xfc   : > { %v464_v15 = vpop.eup %463 }
  0xfd   : > { %v270_v17 = vmul.f32 %v464_v15, %v269_v14 }
  0xff   : > { %v278_v19 = vmul.f32 %v406_v16, %v270_v17 }
 0x101   : > { %v286_v20 = vadd.f32 %v407_v18, %v278_v19 }
 0x103   : > { %287 = vst.msk [vmem:[%s249_s9] sm:$0xff] %vm253_vm0, %v286_v20 }
 0x104   : > { %538 = shalt.err (!%p535_p1)
}
 0x105   : > { %s539_s25 = scalar_lea.hbm %s803_s20, 128  ;;  %s543_s26 = scalar_lea.hbm %s852_s4, 256 }
 0x106   : > { %p540_p11 = scmp.ne.s32.totalorder %s803_s20, %s539_s25  ;;  %p544_p4 = scmp.lt.u32.totalorder %s803_s20, %s852_s4 }
 0x107   : > { %p545_p10 = scmp.lt.u32.totalorder %s543_s26, %s539_s25  ;;  %p547_p13 = scmp.lt.u32.totalorder %s539_s25, %s803_s20 }
 0x108   : > { %p541_p12 = pnand %p540_p11, %p865_p3 }
 0x109   : > { %p546_p6 = por %p545_p10, %p544_p4 }
 0x10a   : > { %p542_p2 = pneg %p541_p12 }
 0x10b   : > { %p548_p7 = por %p547_p13, %p546_p6 }
 0x10d   : > { %p549_p5 = pnand %p548_p7, %p542_p2 }
 0x10f   : > { %552 = shalt.err (!%p549_p5)
}
 0x110   : > { %416 = dma.vmem_to_hbm [thread:$0]  (%p865_p3), %s805_s14, 128, %s803_s20, %s289_s22  }
 0x111 PF: > { %s314_s8 = sand.u32 1, %s583_s15   ;;  %p866_p8 = scmp.ne.s32.totalorder %s858_s28, 0 }
 0x112   : > { %p867_p9 = scmp.ge.s32.totalorder %s595_s18, 2  ;;  %s315_s30 = scalar_lea.sflag [#allocation4], %s314_s8 }
 0x114   : > { %p426_p0 = pnand %p867_p9, %p866_p8 }
 0x116   : > { %578 = dma.done.wait (!%p426_p0), %s315_s30, 128  }
 0x117   : > { %580 = vsyncadd (!%p426_p0), %s315_s30, 4294967168  ;;  %p20_p1 = scmp.ge.s32.totalorder %s650_s21, 4   ;;  %s868_s15 = smov %s587_s16 }
 0x118   : > { %s869_s16 = smov %s591_s17  ;;  %s870_s17 = smov %s662_s24 }
 0x119   : > { %s871_s18 = smov %s650_s21  ;;  %22 = sbr.rel (!%p20_p1) target bundleno = 7 (0x7), region = 94 }
 0x120   :  { %320 = vsyncpa [#allocation3], 1 }
 0x121   :  { %322 = vsyncpa [#allocation3 + $0x1], 1 }
 0x122   :  { %323 = vsyncpa [#allocation6], 1 }
 0x123   :  { %325 = vsyncpa [#allocation6 + $0x1], 1 }
 0x124   :  { %326 = vsyncpa [#allocation4], 1 }
 0x125   :  { %328 = vsyncpa [#allocation4 + $0x1], 1 }

</bundles_post_ra>
